<compile_context>
chip_gen: v7x
topology: tpu7x:2x2x1
jax: 0.10.0
libtpu: 0.0.40
codegen_flags: <defaults>
</compile_context>

<pallas_src>
import jax
import jax.numpy as jnp
from jax.experimental import pallas as pl
from jax.experimental.pallas import tpu as pltpu


# ----------------------------- kernel body ----------------------------------

def _linear_kernel(x_ref, w_ref, b_ref, o_ref):
    # x_ref: [TILE_M, K], w_ref: [K, N_pad], b_ref: [1, N_pad], o_ref: [TILE_M, N_pad]
    acc = jnp.dot(x_ref[...], w_ref[...], preferred_element_type=jnp.float32)
    acc = acc + b_ref[...].astype(jnp.float32)        # f32 bias add (VPU)
    o_ref[...] = acc.astype(o_ref.dtype)


# ----------------------------- helpers ---------------------------------------

def _round_up(x, m):
    return ((x + m - 1) // m) * m


def _sublane(dtype):
    """Minimum second-to-last block dim for this dtype (sublane packing)."""
    return {4: 8, 2: 16, 1: 32}.get(jnp.dtype(dtype).itemsize, 8)


def _vmem_capacity_bytes():
    try:
        return int(pltpu.get_tpu_info().vmem_capacity_bytes)
    except Exception:
        return 64 * 1024 * 1024          # conservative fallback (v7x per-TC VMEM)


def _pick_tile_m(m, k, n_pad, x_dtype, out_dtype, resident_bytes):
    """Pick an MXU-aligned row tile sized against ~50% of this chip's VMEM
    (after the single-buffered resident weight+bias), preferring a tile that
    divides M exactly so no wrapper-side row padding / post-slice is needed.

    Returns (tile_m, need_row_pad)."""
    sub = _sublane(x_dtype)
    x_item = jnp.dtype(x_dtype).itemsize
    o_item = jnp.dtype(out_dtype).itemsize

    budget = int(_vmem_capacity_bytes() * 0.5) - resident_bytes
    per_row = 2 * (k * x_item + n_pad * o_item)       # double-buffered x + out tiles
    max_tile = max(budget // max(per_row, 1), sub)
    max_tile = int(min(max_tile, 1024))                # 512-1024 rows ~ HBM roofline knee

    if m <= max_tile:
        # One full-extent tile: block == full array dims, so no (8,128)
        # constraint applies and no row padding is needed.  grid = (1,).
        return int(m), False

    # MXU-friendly alignment: 256 for v6e/v7x's 2x256 MXU, else 128, else sublane.
    align = 256 if max_tile >= 256 else (128 if max_tile >= 128 else sub)
    max_tile -= max_tile % align

    # Prefer an aligned tile that divides M (avoids the jnp.pad + out[:m] HBM passes).
    for t in range(max_tile, align - 1, -align):
        if m % t == 0:
            return t, False
    # Fall back to any sublane-multiple tile that divides M.
    for t in range(max_tile, sub - 1, -sub):
        if m % t == 0:
            return t, False
    # No divisor found: use the aligned maximum and pad rows in the wrapper.
    return max_tile, True


def _const_spec(shape, index_map):
    """BlockSpec for a grid-invariant operand: single-buffered (its index_map
    is constant, so double-buffering buys nothing and wastes VMEM)."""
    try:
        return pl.BlockSpec(shape, index_map, pipeline_mode=pl.Buffered(1))
    except Exception:                      # older API without pipeline_mode
        return pl.BlockSpec(shape, index_map)


def prepare_linear_params(weight, bias, *, param_dtype=None):
    """One-time (init) parameter prep — NOT in the per-call hot path.

    weight : [output_dim, input_dim]  (PyTorch nn.Linear convention)
    bias   : [output_dim]
    param_dtype : optional operand dtype for the weight (e.g. jnp.bfloat16 on
                  v5e/v6e/v7x to halve DMA bytes and hit the native MXU path).

    Returns (w_t, b2d, output_dim):
      w_t : [input_dim, N_pad]  pre-transposed, N padded to a multiple of 128
            (lane-dense unmasked output stores)
      b2d : [1, N_pad] float32  (bias add stays f32 on the VPU)
    """
    output_dim, input_dim = weight.shape
    n_pad = _round_up(output_dim, 128)
    w_t = jnp.asarray(weight).T                         # [K, N]
    if param_dtype is not None:
        w_t = w_t.astype(param_dtype)
    b = jnp.asarray(bias).astype(jnp.float32)
    if n_pad != output_dim:
        w_t = jnp.pad(w_t, ((0, 0), (0, n_pad - output_dim)))
        b = jnp.pad(b, (0, n_pad - output_dim))
    return w_t, b.reshape(1, n_pad), output_dim


# ----------------------------- forward wrapper -------------------------------

def feature_projection(x, w_t, b2d, output_dim, *, tile_m=None, out_dtype=None):
    """y = x @ W^T + b over the last axis of x (nn.Linear semantics).

    x          : [..., input_dim]
    w_t, b2d   : outputs of prepare_linear_params()
    output_dim : true (un-padded) output feature dim
    """
    k, n_pad = w_t.shape
    lead_shape = x.shape[:-1]
    assert x.shape[-1] == k, "input feature dim mismatch"

    # Keep both MXU operands in the same dtype (e.g. bf16 x bf16) so the dot
    # hits the fast native path instead of a promoted mixed-dtype one.
    if x.dtype != w_t.dtype:
        x = x.astype(w_t.dtype)
    if out_dtype is None:
        out_dtype = x.dtype
    out_dtype = jnp.dtype(out_dtype)

    x2d = x.reshape(-1, k)                              # [M, K]
    m = x2d.shape[0]
    x_item = x2d.dtype.itemsize
    o_item = out_dtype.itemsize
    resident_bytes = k * n_pad * w_t.dtype.itemsize + n_pad * b2d.dtype.itemsize

    if tile_m is None:
        tile_m, need_pad = _pick_tile_m(m, k, n_pad, x2d.dtype, out_dtype,
                                        resident_bytes)
    else:
        sub = _sublane(x2d.dtype)
        tile_m = max(sub, tile_m - (tile_m % sub))      # dtype-aware rounding
        tile_m = min(tile_m, _round_up(m, sub))
        need_pad = (m % tile_m) != 0

    m_pad = m
    if need_pad:
        m_pad = _round_up(m, tile_m)
        x2d = jnp.pad(x2d, ((0, m_pad - m), (0, 0)))
    grid = (m_pad // tile_m,)

    # Per-chip VMEM ceiling: double-buffered x/out tiles + single-buffered
    # weight+bias, with headroom, capped at 90% of this chip's physical VMEM.
    vmem_need = 2 * tile_m * (k * x_item + n_pad * o_item) + resident_bytes
    vmem_cap = _vmem_capacity_bytes()
    vmem_limit = int(min(max(int(vmem_need * 1.5), 16 * 1024 * 1024),
                         int(vmem_cap * 0.9)))

    cost = pl.CostEstimate(
        flops=2 * m_pad * k * n_pad,
        transcendentals=0,
        bytes_accessed=(m_pad * k * x_item + resident_bytes
                        + m_pad * n_pad * o_item),
    )

    out2d = pl.pallas_call(
        _linear_kernel,
        out_shape=jax.ShapeDtypeStruct((m_pad, n_pad), out_dtype),
        grid_spec=pltpu.PrefetchScalarGridSpec(
            num_scalar_prefetch=0,
            grid=grid,
            in_specs=[
                pl.BlockSpec((tile_m, k), lambda i: (i, 0)),   # x tile (pipelined)
                _const_spec((k, n_pad), lambda i: (0, 0)),     # weight (resident, 1-buf)
                _const_spec((1, n_pad), lambda i: (0, 0)),     # bias   (resident, 1-buf)
            ],
            out_specs=pl.BlockSpec((tile_m, n_pad), lambda i: (i, 0)),
        ),
        compiler_params=pltpu.CompilerParams(
            # "parallel" lets the runtime shard the row axis across both v7x
            # TensorCores; it is harmless (single-core) on v5e/v6e.
            dimension_semantics=("parallel",),
            vmem_limit_bytes=vmem_limit,
        ),
        cost_estimate=cost,
    )(x2d, w_t, b2d)

    # Only slice when padding was actually introduced (each slice is an extra
    # HBM pass on a memory-bound linear).
    if m_pad != m:
        out2d = out2d[:m]
    if n_pad != output_dim:
        out2d = out2d[:, :output_dim]
    return out2d.reshape(*lead_shape, output_dim)


# ----------------------------- demo / self-test -------------------------------

if __name__ == "__main__":
    # Small shapes consistent with the module: Linear(input_dim=32, output_dim=64)
    # applied to x of shape [batch, seq, input_dim] -> M = 2*256 = 512 rows.
    batch, seq, input_dim, output_dim = 2, 256, 32, 64

    key = jax.random.PRNGKey(0)
    kx, kw, kb = jax.random.split(key, 3)

    x = jax.random.normal(kx, (batch, seq, input_dim), dtype=jnp.float32)
    # PyTorch-like uniform init with bound 1/sqrt(fan_in), PyTorch weight layout.
    bound = 1.0 / (input_dim ** 0.5)
    weight = jax.random.uniform(kw, (output_dim, input_dim),
                                minval=-bound, maxval=bound, dtype=jnp.float32)
    bias = jax.random.uniform(kb, (output_dim,),
                              minval=-bound, maxval=bound, dtype=jnp.float32)

    y_ref = x @ weight.T + bias                         # nn.Linear reference

    # --- f32 path, auto tile: M=512 fits one full-extent tile, grid=(1,), no pad.
    w_t, b2d, out_dim = prepare_linear_params(weight, bias)
    y = feature_projection(x, w_t, b2d, out_dim)
    jax.block_until_ready(y)
    assert y.shape == (batch, seq, output_dim)
    assert jnp.allclose(y, y_ref, atol=1e-5, rtol=1e-5)

    # --- f32 path, forced multi-step pipelined grid (tile_m=128 -> grid=(4,)).
    y2 = feature_projection(x, w_t, b2d, out_dim, tile_m=128)
    jax.block_until_ready(y2)
    assert jnp.allclose(y2, y_ref, atol=1e-5, rtol=1e-5)

    # --- bf16 operand path (halved DMA / native MXU); f32 accumulation + bias,
    #     f32 output for the comparison.
    w_t16, b2d16, _ = prepare_linear_params(weight, bias, param_dtype=jnp.bfloat16)
    y3 = feature_projection(x, w_t16, b2d16, out_dim, tile_m=128,
                            out_dtype=jnp.float32)
    jax.block_until_ready(y3)
    assert jnp.allclose(y3, y_ref, atol=5e-2, rtol=5e-2)

    print("KERNEL_OK")
</pallas_src>

<mosaic_0001>
module attributes {stable_mosaic.version = 11 : i64} {
  func.func @_linear_kernel(%arg0: i32, %arg1: memref<512x32xf32, #tpu.memory_space<vmem>>, %arg2: memref<32x128xf32, #tpu.memory_space<vmem>>, %arg3: memref<1x128xf32, #tpu.memory_space<vmem>>, %arg4: memref<512x128xf32, #tpu.memory_space<vmem>>) attributes {dimension_semantics = [#tpu.dimension_semantics<parallel>], iteration_bounds = array<i64: 1>, scalar_prefetch = 0 : i64, scratch_operands = 0 : i64, tpu.core_type = #tpu.core_type<tc>, window_params = [{transform_indices = @transform_0, window_bounds = array<i64: 512, 32>}, {pipeline_mode = #tpu.pipeline_mode<synchronous>, transform_indices = @transform_1, window_bounds = array<i64: 32, 128>}, {pipeline_mode = #tpu.pipeline_mode<synchronous>, transform_indices = @transform_2, window_bounds = array<i64: 1, 128>}, {transform_indices = @transform_3, window_bounds = array<i64: 512, 128>}]} {
    %c0 = arith.constant 0 : index
    %c0_0 = arith.constant 0 : index
    %0 = vector.load %arg1[%c0, %c0_0] : memref<512x32xf32, #tpu.memory_space<vmem>>, vector<512x32xf32>
    %c0_1 = arith.constant 0 : index
    %c0_2 = arith.constant 0 : index
    %1 = vector.load %arg2[%c0_1, %c0_2] : memref<32x128xf32, #tpu.memory_space<vmem>>, vector<32x128xf32>
    %cst = arith.constant dense<0.000000e+00> : vector<512x128xf32>
    %2 = tpu.matmul %0, %1, %cst {dimension_numbers = #tpu.dot_dimension_numbers<[1], [0], [0], [1], [0, 0, 1, 1], [], []>} : vector<512x32xf32>, vector<32x128xf32>, vector<512x128xf32> -> vector<512x128xf32>
    %c0_3 = arith.constant 0 : index
    %c0_4 = arith.constant 0 : index
    %3 = vector.load %arg3[%c0_3, %c0_4] : memref<1x128xf32, #tpu.memory_space<vmem>>, vector<1x128xf32>
    %4 = vector.broadcast %3 : vector<1x128xf32> to vector<512x128xf32>
    %5 = arith.addf %2, %4 : vector<512x128xf32>
    %c0_5 = arith.constant 0 : index
    %c0_6 = arith.constant 0 : index
    %6 = vector.load %arg4[%c0_5, %c0_6] : memref<512x128xf32, #tpu.memory_space<vmem>>, vector<512x128xf32>
    tpu.vector_store %arg4[%c0_5, %c0_6], %5 {strides = array<i32>} : memref<512x128xf32, #tpu.memory_space<vmem>>, vector<512x128xf32>,
    return
  }
  func.func @transform_0(%arg0: i32) -> (i32, i32) {
    %c0_i32 = arith.constant 0 : i32
    %c0_i32_0 = arith.constant 0 : i32
    return %arg0, %c0_i32 : i32, i32
  }
  func.func @transform_1(%arg0: i32) -> (i32, i32) {
    %c0_i32 = arith.constant 0 : i32
    %c0_i32_0 = arith.constant 0 : i32
    %c0_i32_1 = arith.constant 0 : i32
    return %c0_i32, %c0_i32_0 : i32, i32
  }
  func.func @transform_2(%arg0: i32) -> (i32, i32) {
    %c0_i32 = arith.constant 0 : i32
    %c0_i32_0 = arith.constant 0 : i32
    %c0_i32_1 = arith.constant 0 : i32
    return %c0_i32, %c0_i32_0 : i32, i32
  }
  func.func @transform_3(%arg0: i32) -> (i32, i32) {
    %c0_i32 = arith.constant 0 : i32
    %c0_i32_0 = arith.constant 0 : i32
    return %arg0, %c0_i32 : i32, i32
  }
}

</mosaic_0001>

<bundles_post_ra>
// kernel: tpu_custom_call.1
= control target key start
LH: loop header
LB: loop body
LE: loop exit
PB: predicated region body
PF: predicated region fallthrough
CT: control target
= control target key end

     0   :  { %vm90_vm0 = vcmask 261120   ;;  %s1396_s0 = inlined_call_operand.vmem [shape: f32[512,32], index: 0, kind: input, shape index: {}]   ;;  %s1397_s1 = inlined_call_operand.vmem [shape: f32[32,128], index: 1, kind: input, shape index: {}]   ;;  %s1398_s2 = inlined_call_operand.vmem [shape: f32[1,128], index: 2, kind: input, shape index: {}]   ;;  %s1399_s3 = inlined_call_operand.hbm [shape: f32[512,128], index: 3, kind: output, shape index: {}]  }
   0x1   :  { %v79_v0 = vld [vmem:[%s1397_s1] sm:$0xff]  ;;  %v80_v1 = vld [vmem:[%s1397_s1 + $0x8] sm:$0xff]  ;;  %v81_v2 = vld [vmem:[%s1397_s1 + $0x10] sm:$0xff] }
   0x2   :  { %v985_v3 = vpack.c.bf16 %v80_v1, %v79_v0  ;;  %v82_v4 = vld [vmem:[%s1397_s1 + $0x18] sm:$0xff]  ;;  %v15_v5 = vld [vmem:[%s1396_s0] sm:$0xff]  ;;  %v16_v8 = vld [vmem:[%s1396_s0 + $0x8] sm:$0xff] }
   0x3   :  { %v47_v6 = vld [vmem:[%s1396_s0 + $0x100] sm:$0xff]  ;;  %v989_v7 = vpack.c.bf16 %v82_v4, %v81_v2  ;;  %889 = vmatprep.mubr.msk.f32.mxu0 %vm90_vm0, %v15_v5  ;;  %v48_v9 = vld [vmem:[%s1396_s0 + $0x108] sm:$0xff]  ;;  %v17_v10 = vld [vmem:[%s1396_s0 + $0x10] sm:$0xff] }
   0x4   :  { %937 = vmatprep.mubr.msk.f32.mxu1 %vm90_vm0, %v47_v6  ;;  %986 = vmatprep.subr.bf16.mxu0 %v985_v3  ;;  %v49_v11 = vld [vmem:[%s1396_s0 + $0x110] sm:$0xff]  ;;  %v18_v12 = vld [vmem:[%s1396_s0 + $0x18] sm:$0xff]  ;;  %v19_v14 = vld [vmem:[%s1396_s0 + $0x20] sm:$0xff] }
   0x5   :  { %993 = vmatprep.subr.bf16.mxu1 %v985_v3  ;;  %988 = vmatpush3.bf16.msra.mxu0 %v985_v3  ;;  %v50_v13 = vld [vmem:[%s1396_s0 + $0x118] sm:$0xff]  ;;  %v51_v15 = vld [vmem:[%s1396_s0 + $0x120] sm:$0xff]  ;;  %v20_v16 = vld [vmem:[%s1396_s0 + $0x28] sm:$0xff] }
   0x6   :  { %995 = vmatpush3.bf16.msra.mxu1 %v985_v3  ;;  %990 = vmatprep.subr.bf16.mxu0 %v989_v7  ;;  %v52_v17 = vld [vmem:[%s1396_s0 + $0x128] sm:$0xff]  ;;  %v21_v18 = vld [vmem:[%s1396_s0 + $0x30] sm:$0xff]  ;;  %v22_v20 = vld [vmem:[%s1396_s0 + $0x38] sm:$0xff] }
   0x7   :  { %994 = vmatprep.subr.bf16.mxu1 %v989_v7  ;;  %v53_v19 = vld [vmem:[%s1396_s0 + $0x130] sm:$0xff]  ;;  %v54_v21 = vld [vmem:[%s1396_s0 + $0x138] sm:$0xff]  ;;  %v23_v22 = vld [vmem:[%s1396_s0 + $0x40] sm:$0xff] }
   0x8   :  { %v55_v23 = vld [vmem:[%s1396_s0 + $0x140] sm:$0xff] }
   0x9   :  { %992 = vmatpush3.bf16.msra.mxu0 %v989_v7 }
   0xa   :  { %996 = vmatpush3.bf16.msra.mxu1 %v989_v7 }
   0xc   :  { %890 = vmatmul.mubr.msk.f32.vlgmr.msra.gmra.mrb[0].mxu0 %vm90_vm0, %v16_v8 }
   0xd   :  { %938 = vmatmul.mubr.msk.f32.vlgmr.msra.gmra.mrb[0].mxu1 %vm90_vm0, %v48_v9  ;;  %892 = vmatprep.mubr.msk.f32.mxu0 %vm90_vm0, %v17_v10 }
   0xe   :  { %940 = vmatprep.mubr.msk.f32.mxu1 %vm90_vm0, %v49_v11 }
  0x10   :  { %893 = vmatmul.mubr.msk.f32.gmra.mrb[2].mxu0 %vm90_vm0, %v18_v12 }
  0x11   :  { %941 = vmatmul.mubr.msk.f32.gmra.mrb[2].mxu1 %vm90_vm0, %v50_v13  ;;  %895 = vmatprep.mubr.msk.f32.mxu0 %vm90_vm0, %v19_v14 }
  0x12   :  { %943 = vmatprep.mubr.msk.f32.mxu1 %vm90_vm0, %v51_v15 }
  0x14   :  { %896 = vmatmul.mubr.msk.f32.gmra.mrb[4].mxu0 %vm90_vm0, %v20_v16 }
  0x15   :  { %944 = vmatmul.mubr.msk.f32.gmra.mrb[4].mxu1 %vm90_vm0, %v52_v17  ;;  %898 = vmatprep.mubr.msk.f32.mxu0 %vm90_vm0, %v21_v18 }
  0x16   :  { %946 = vmatprep.mubr.msk.f32.mxu1 %vm90_vm0, %v53_v19 }
  0x17   :  { %8 = vsyncpa [#allocation3], 0  ;;  %v24_v24 = vld [vmem:[%s1396_s0 + $0x48] sm:$0xff]  ;;  %v25_v26 = vld [vmem:[%s1396_s0 + $0x50] sm:$0xff] }
  0x18   :  { %899 = vmatmul.mubr.msk.f32.gmra.mrb[6].mxu0 %vm90_vm0, %v22_v20  ;;  %v56_v25 = vld [vmem:[%s1396_s0 + $0x148] sm:$0xff]  ;;  %v57_v27 = vld [vmem:[%s1396_s0 + $0x150] sm:$0xff]  ;;  %v26_v28 = vld [vmem:[%s1396_s0 + $0x58] sm:$0xff] }
  0x19   :  { %947 = vmatmul.mubr.msk.f32.gmra.mrb[6].mxu1 %vm90_vm0, %v54_v21  ;;  %901 = vmatprep.mubr.msk.f32.mxu0 %vm90_vm0, %v23_v22  ;;  %v58_v29 = vld [vmem:[%s1396_s0 + $0x158] sm:$0xff]  ;;  %v27_v30 = vld [vmem:[%s1396_s0 + $0x60] sm:$0xff]  ;;  %v28_v32 = vld [vmem:[%s1396_s0 + $0x68] sm:$0xff] }
  0x1a   :  { %949 = vmatprep.mubr.msk.f32.mxu1 %vm90_vm0, %v55_v23  ;;  %v59_v31 = vld [vmem:[%s1396_s0 + $0x160] sm:$0xff]  ;;  %v60_v33 = vld [vmem:[%s1396_s0 + $0x168] sm:$0xff]  ;;  %v29_v34 = vld [vmem:[%s1396_s0 + $0x70] sm:$0xff] }
  0x1b   :  { %v61_v35 = vld [vmem:[%s1396_s0 + $0x170] sm:$0xff]  ;;  %v30_v36 = vld [vmem:[%s1396_s0 + $0x78] sm:$0xff]  ;;  %v31_v38 = vld [vmem:[%s1396_s0 + $0x80] sm:$0xff] }
  0x1c   :  { %902 = vmatmul.mubr.msk.f32.gmra.mrb[8].mxu0 %vm90_vm0, %v24_v24  ;;  %v62_v37 = vld [vmem:[%s1396_s0 + $0x178] sm:$0xff]  ;;  %v63_v39 = vld [vmem:[%s1396_s0 + $0x180] sm:$0xff]  ;;  %v32_v40 = vld [vmem:[%s1396_s0 + $0x88] sm:$0xff] }
  0x1d   :  { %950 = vmatmul.mubr.msk.f32.gmra.mrb[8].mxu1 %vm90_vm0, %v56_v25  ;;  %904 = vmatprep.mubr.msk.f32.mxu0 %vm90_vm0, %v25_v26  ;;  %v64_v41 = vld [vmem:[%s1396_s0 + $0x188] sm:$0xff]  ;;  %v33_v42 = vld [vmem:[%s1396_s0 + $0x90] sm:$0xff]  ;;  %v34_v44 = vld [vmem:[%s1396_s0 + $0x98] sm:$0xff] }
  0x1e   :  { %952 = vmatprep.mubr.msk.f32.mxu1 %vm90_vm0, %v57_v27  ;;  %v65_v43 = vld [vmem:[%s1396_s0 + $0x190] sm:$0xff]  ;;  %v66_v45 = vld [vmem:[%s1396_s0 + $0x198] sm:$0xff]  ;;  %v35_v46 = vld [vmem:[%s1396_s0 + $0xa0] sm:$0xff] }
  0x1f   :  { %v67_v47 = vld [vmem:[%s1396_s0 + $0x1a0] sm:$0xff]  ;;  %v36_v48 = vld [vmem:[%s1396_s0 + $0xa8] sm:$0xff]  ;;  %v37_v50 = vld [vmem:[%s1396_s0 + $0xb0] sm:$0xff] }
  0x20   :  { %905 = vmatmul.mubr.msk.f32.gmra.mrb[10].mxu0 %vm90_vm0, %v26_v28  ;;  %v68_v49 = vld [vmem:[%s1396_s0 + $0x1a8] sm:$0xff]  ;;  %v69_v51 = vld [vmem:[%s1396_s0 + $0x1b0] sm:$0xff]  ;;  %v38_v52 = vld [vmem:[%s1396_s0 + $0xb8] sm:$0xff] }
  0x21   :  { %953 = vmatmul.mubr.msk.f32.gmra.mrb[10].mxu1 %vm90_vm0, %v58_v29  ;;  %907 = vmatprep.mubr.msk.f32.mxu0 %vm90_vm0, %v27_v30  ;;  %v70_v53 = vld [vmem:[%s1396_s0 + $0x1b8] sm:$0xff]  ;;  %v39_v54 = vld [vmem:[%s1396_s0 + $0xc0] sm:$0xff]  ;;  %v40_v56 = vld [vmem:[%s1396_s0 + $0xc8] sm:$0xff] }
  0x22   :  { %955 = vmatprep.mubr.msk.f32.mxu1 %vm90_vm0, %v59_v31  ;;  %v71_v55 = vld [vmem:[%s1396_s0 + $0x1c0] sm:$0xff]  ;;  %v72_v57 = vld [vmem:[%s1396_s0 + $0x1c8] sm:$0xff]  ;;  %v41_v58 = vld [vmem:[%s1396_s0 + $0xd0] sm:$0xff] }
  0x23   :  { %v73_v59 = vld [vmem:[%s1396_s0 + $0x1d0] sm:$0xff]  ;;  %v42_v60 = vld [vmem:[%s1396_s0 + $0xd8] sm:$0xff]  ;;  %v43_v62 = vld [vmem:[%s1396_s0 + $0xe0] sm:$0xff] }
  0x24   :  { %908 = vmatmul.mubr.msk.f32.gmra.mrb[12].mxu0 %vm90_vm0, %v28_v32  ;;  %v74_v61 = vld [vmem:[%s1396_s0 + $0x1d8] sm:$0xff]  ;;  %v75_v63 = vld [vmem:[%s1396_s0 + $0x1e0] sm:$0xff]  ;;  %v44_v0 = vld [vmem:[%s1396_s0 + $0xe8] sm:$0xff] }
  0x25   :  { %956 = vmatmul.mubr.msk.f32.gmra.mrb[12].mxu1 %vm90_vm0, %v60_v33  ;;  %910 = vmatprep.mubr.msk.f32.mxu0 %vm90_vm0, %v29_v34  ;;  %v76_v1 = vld [vmem:[%s1396_s0 + $0x1e8] sm:$0xff]  ;;  %v45_v2 = vld [vmem:[%s1396_s0 + $0xf0] sm:$0xff]  ;;  %v46_v4 = vld [vmem:[%s1396_s0 + $0xf8] sm:$0xff] }
  0x26   :  { %958 = vmatprep.mubr.msk.f32.mxu1 %vm90_vm0, %v61_v35  ;;  %v77_v3 = vld [vmem:[%s1396_s0 + $0x1f0] sm:$0xff]  ;;  %v78_v5 = vld [vmem:[%s1396_s0 + $0x1f8] sm:$0xff]  ;;  %v1318_v6 = vld [vmem:[%s1398_s2] ss:$0 sm:$0xff]  ;;  %s1024_s0 = smov [#allocation2]  }
  0x27   :  { %s737_s2 = sshll.u32 %s1024_s0, 4  ;;  %s738_s2 = int_to_ptr.vmem [resolvable:$true] %s737_s2 }
  0x28   :  { %911 = vmatmul.mubr.msk.f32.gmra.mrb[14].mxu0 %vm90_vm0, %v30_v36  ;;  %s1000_s10 = scalar_lea.vmem %s738_s2, 8192  ;;  %p1005_p1 = scmp.lt.s32.totalorder %s738_s2, %s738_s2 }
  0x29   :  { %959 = vmatmul.mubr.msk.f32.gmra.mrb[14].mxu1 %vm90_vm0, %v62_v37  ;;  %913 = vmatprep.mubr.msk.f32.mxu0 %vm90_vm0, %v31_v38  ;;  %p1001_p0 = scmp.ne.s32.totalorder %s738_s2, %s1000_s10  ;;  %p1006_p2 = scmp.lt.s32.totalorder %s1000_s10, %s1000_s10 }
  0x2a   :  { %961 = vmatprep.mubr.msk.f32.mxu1 %vm90_vm0, %v63_v39 }
  0x2b   :  { %p1007_p3 = por %p1006_p2, %p1005_p1 }
  0x2c   :  { %914 = vmatmul.mubr.msk.f32.gmra.mrb[16].mxu0 %vm90_vm0, %v32_v40 }
  0x2d   :  { %962 = vmatmul.mubr.msk.f32.gmra.mrb[16].mxu1 %vm90_vm0, %v64_v41  ;;  %916 = vmatprep.mubr.msk.f32.mxu0 %vm90_vm0, %v33_v42  ;;  %p1008_p4 = pnand %p1007_p3, %p1001_p0 }
  0x2e   :  { %964 = vmatprep.mubr.msk.f32.mxu1 %vm90_vm0, %v65_v43 }
  0x30   :  { %917 = vmatmul.mubr.msk.f32.gmra.mrb[18].mxu0 %vm90_vm0, %v34_v44 }
  0x31   :  { %965 = vmatmul.mubr.msk.f32.gmra.mrb[18].mxu1 %vm90_vm0, %v66_v45  ;;  %919 = vmatprep.mubr.msk.f32.mxu0 %vm90_vm0, %v35_v46 }
  0x32   :  { %967 = vmatprep.mubr.msk.f32.mxu1 %vm90_vm0, %v67_v47 }
  0x34   :  { %920 = vmatmul.mubr.msk.f32.gmra.mrb[20].mxu0 %vm90_vm0, %v36_v48 }
  0x35   :  { %968 = vmatmul.mubr.msk.f32.gmra.mrb[20].mxu1 %vm90_vm0, %v68_v49  ;;  %922 = vmatprep.mubr.msk.f32.mxu0 %vm90_vm0, %v37_v50 }
  0x36   :  { %970 = vmatprep.mubr.msk.f32.mxu1 %vm90_vm0, %v69_v51 }
  0x38   :  { %923 = vmatmul.mubr.msk.f32.gmra.mrb[22].mxu0 %vm90_vm0, %v38_v52 }
  0x39   :  { %971 = vmatmul.mubr.msk.f32.gmra.mrb[22].mxu1 %vm90_vm0, %v70_v53  ;;  %925 = vmatprep.mubr.msk.f32.mxu0 %vm90_vm0, %v39_v54 }
  0x3a   :  { %973 = vmatprep.mubr.msk.f32.mxu1 %vm90_vm0, %v71_v55 }
  0x3c   :  { %926 = vmatmul.mubr.msk.f32.gmra.mrb[24].mxu0 %vm90_vm0, %v40_v56 }
  0x3d   :  { %974 = vmatmul.mubr.msk.f32.gmra.mrb[24].mxu1 %vm90_vm0, %v72_v57  ;;  %928 = vmatprep.mubr.msk.f32.mxu0 %vm90_vm0, %v41_v58 }
  0x3e   :  { %976 = vmatprep.mubr.msk.f32.mxu1 %vm90_vm0, %v73_v59 }
  0x40   :  { %929 = vmatmul.mubr.msk.f32.gmra.mrb[26].mxu0 %vm90_vm0, %v42_v60 }
  0x41   :  { %977 = vmatmul.mubr.msk.f32.gmra.mrb[26].mxu1 %vm90_vm0, %v74_v61  ;;  %931 = vmatprep.mubr.msk.f32.mxu0 %vm90_vm0, %v43_v62 }
  0x42   :  { %979 = vmatprep.mubr.msk.f32.mxu1 %vm90_vm0, %v75_v63 }
  0x44   :  { %932 = vmatmul.mubr.msk.f32.gmra.mrb[28].mxu0 %vm90_vm0, %v44_v0 }
  0x45   :  { %980 = vmatmul.mubr.msk.f32.gmra.mrb[28].mxu1 %vm90_vm0, %v76_v1  ;;  %934 = vmatprep.mubr.msk.f32.mxu0 %vm90_vm0, %v45_v2 }
  0x46   :  { %982 = vmatprep.mubr.msk.f32.mxu1 %vm90_vm0, %v77_v3 }
  0x48   :  { %935 = vmatmul.mubr.msk.f32.gmra.mrb[30].mxu0 %vm90_vm0, %v46_v4 }
  0x49   :  { %983 = vmatmul.mubr.msk.f32.gmra.mrb[30].mxu1 %vm90_vm0, %v78_v5 }
  0xdf   :  { %v891_v7 = vpop.f32.mrb[0].mxu0 }
  0xe0   :  { %v939_v8 = vpop.f32.mrb[0].mxu1  ;;  %v355_v9 = vadd.f32 %v891_v7, %v1318_v6  ;;  %v349_v11 = vpop.f32.mrb[1].mxu0 }
  0xe1   :  { %v515_v10 = vadd.f32 %v939_v8, %v1318_v6  ;;  %v509_v12 = vpop.f32.mrb[1].mxu1  ;;  %v350_v13 = vadd.f32 %v1318_v6, %v349_v11 }
  0xe2   :  { %v510_v14 = vadd.f32 %v1318_v6, %v509_v12  ;;  %669 = vst [vmem:[#allocation2 + $0x8] sm:$0xff] %v355_v9 }
  0xe3   :  { %701 = vst [vmem:[#allocation2 + $0x108] sm:$0xff] %v515_v10  ;;  %668 = vst [vmem:[#allocation2] sm:$0xff] %v350_v13  ;;  %v894_v15 = vpop.f32.mrb[2].mxu0 }
  0xe4   :  { %700 = vst [vmem:[#allocation2 + $0x100] sm:$0xff] %v510_v14  ;;  %v942_v16 = vpop.f32.mrb[2].mxu1  ;;  %v365_v17 = vadd.f32 %v894_v15, %v1318_v6  ;;  %v359_v19 = vpop.f32.mrb[3].mxu0 }
  0xe5   :  { %v525_v18 = vadd.f32 %v942_v16, %v1318_v6  ;;  %v519_v20 = vpop.f32.mrb[3].mxu1  ;;  %v360_v21 = vadd.f32 %v1318_v6, %v359_v19 }
  0xe6   :  { %v520_v22 = vadd.f32 %v1318_v6, %v519_v20  ;;  %671 = vst [vmem:[#allocation2 + $0x18] sm:$0xff] %v365_v17 }
  0xe7   :  { %703 = vst [vmem:[#allocation2 + $0x118] sm:$0xff] %v525_v18  ;;  %670 = vst [vmem:[#allocation2 + $0x10] sm:$0xff] %v360_v21  ;;  %v897_v23 = vpop.f32.mrb[4].mxu0 }
  0xe8   :  { %702 = vst [vmem:[#allocation2 + $0x110] sm:$0xff] %v520_v22  ;;  %v945_v24 = vpop.f32.mrb[4].mxu1  ;;  %v375_v25 = vadd.f32 %v897_v23, %v1318_v6  ;;  %v369_v27 = vpop.f32.mrb[5].mxu0 }
  0xe9   :  { %v535_v26 = vadd.f32 %v945_v24, %v1318_v6  ;;  %v529_v28 = vpop.f32.mrb[5].mxu1  ;;  %v370_v29 = vadd.f32 %v1318_v6, %v369_v27 }
  0xea   :  { %v530_v30 = vadd.f32 %v1318_v6, %v529_v28  ;;  %673 = vst [vmem:[#allocation2 + $0x28] sm:$0xff] %v375_v25 }
  0xeb   :  { %705 = vst [vmem:[#allocation2 + $0x128] sm:$0xff] %v535_v26  ;;  %672 = vst [vmem:[#allocation2 + $0x20] sm:$0xff] %v370_v29  ;;  %v900_v31 = vpop.f32.mrb[6].mxu0 }
  0xec   :  { %704 = vst [vmem:[#allocation2 + $0x120] sm:$0xff] %v530_v30  ;;  %v948_v32 = vpop.f32.mrb[6].mxu1  ;;  %v385_v33 = vadd.f32 %v900_v31, %v1318_v6  ;;  %v379_v35 = vpop.f32.mrb[7].mxu0 }
  0xed   :  { %v545_v34 = vadd.f32 %v948_v32, %v1318_v6  ;;  %v539_v36 = vpop.f32.mrb[7].mxu1  ;;  %v380_v37 = vadd.f32 %v1318_v6, %v379_v35 }
  0xee   :  { %v540_v38 = vadd.f32 %v1318_v6, %v539_v36  ;;  %675 = vst [vmem:[#allocation2 + $0x38] sm:$0xff] %v385_v33 }
  0xef   :  { %707 = vst [vmem:[#allocation2 + $0x138] sm:$0xff] %v545_v34  ;;  %674 = vst [vmem:[#allocation2 + $0x30] sm:$0xff] %v380_v37  ;;  %v903_v39 = vpop.f32.mrb[8].mxu0 }
  0xf0   :  { %706 = vst [vmem:[#allocation2 + $0x130] sm:$0xff] %v540_v38  ;;  %v951_v40 = vpop.f32.mrb[8].mxu1  ;;  %v395_v41 = vadd.f32 %v903_v39, %v1318_v6  ;;  %v389_v43 = vpop.f32.mrb[9].mxu0 }
  0xf1   :  { %v555_v42 = vadd.f32 %v951_v40, %v1318_v6  ;;  %v549_v44 = vpop.f32.mrb[9].mxu1  ;;  %v390_v45 = vadd.f32 %v1318_v6, %v389_v43 }
  0xf2   :  { %v550_v46 = vadd.f32 %v1318_v6, %v549_v44  ;;  %677 = vst [vmem:[#allocation2 + $0x48] sm:$0xff] %v395_v41 }
  0xf3   :  { %709 = vst [vmem:[#allocation2 + $0x148] sm:$0xff] %v555_v42  ;;  %676 = vst [vmem:[#allocation2 + $0x40] sm:$0xff] %v390_v45  ;;  %v906_v47 = vpop.f32.mrb[10].mxu0 }
  0xf4   :  { %708 = vst [vmem:[#allocation2 + $0x140] sm:$0xff] %v550_v46  ;;  %v954_v48 = vpop.f32.mrb[10].mxu1  ;;  %v405_v49 = vadd.f32 %v906_v47, %v1318_v6  ;;  %v399_v51 = vpop.f32.mrb[11].mxu0 }
  0xf5   :  { %v565_v50 = vadd.f32 %v954_v48, %v1318_v6  ;;  %v559_v52 = vpop.f32.mrb[11].mxu1  ;;  %v400_v53 = vadd.f32 %v1318_v6, %v399_v51 }
  0xf6   :  { %v560_v54 = vadd.f32 %v1318_v6, %v559_v52  ;;  %679 = vst [vmem:[#allocation2 + $0x58] sm:$0xff] %v405_v49 }
  0xf7   :  { %711 = vst [vmem:[#allocation2 + $0x158] sm:$0xff] %v565_v50  ;;  %678 = vst [vmem:[#allocation2 + $0x50] sm:$0xff] %v400_v53  ;;  %v909_v55 = vpop.f32.mrb[12].mxu0 }
  0xf8   :  { %710 = vst [vmem:[#allocation2 + $0x150] sm:$0xff] %v560_v54  ;;  %v957_v56 = vpop.f32.mrb[12].mxu1  ;;  %v415_v57 = vadd.f32 %v909_v55, %v1318_v6  ;;  %v409_v59 = vpop.f32.mrb[13].mxu0 }
  0xf9   :  { %v575_v58 = vadd.f32 %v957_v56, %v1318_v6  ;;  %v569_v60 = vpop.f32.mrb[13].mxu1  ;;  %v410_v61 = vadd.f32 %v1318_v6, %v409_v59 }
  0xfa   :  { %v570_v62 = vadd.f32 %v1318_v6, %v569_v60  ;;  %681 = vst [vmem:[#allocation2 + $0x68] sm:$0xff] %v415_v57 }
  0xfb   :  { %713 = vst [vmem:[#allocation2 + $0x168] sm:$0xff] %v575_v58  ;;  %680 = vst [vmem:[#allocation2 + $0x60] sm:$0xff] %v410_v61  ;;  %v912_v63 = vpop.f32.mrb[14].mxu0 }
  0xfc   :  { %712 = vst [vmem:[#allocation2 + $0x160] sm:$0xff] %v570_v62  ;;  %v960_v0 = vpop.f32.mrb[14].mxu1  ;;  %v425_v1 = vadd.f32 %v912_v63, %v1318_v6  ;;  %v419_v3 = vpop.f32.mrb[15].mxu0 }
  0xfd   :  { %v585_v2 = vadd.f32 %v960_v0, %v1318_v6  ;;  %v579_v4 = vpop.f32.mrb[15].mxu1  ;;  %v420_v5 = vadd.f32 %v1318_v6, %v419_v3 }
  0xfe   :  { %v580_v7 = vadd.f32 %v1318_v6, %v579_v4  ;;  %683 = vst [vmem:[#allocation2 + $0x78] sm:$0xff] %v425_v1 }
  0xff   :  { %715 = vst [vmem:[#allocation2 + $0x178] sm:$0xff] %v585_v2  ;;  %682 = vst [vmem:[#allocation2 + $0x70] sm:$0xff] %v420_v5  ;;  %v915_v8 = vpop.f32.mrb[16].mxu0 }
 0x100   :  { %714 = vst [vmem:[#allocation2 + $0x170] sm:$0xff] %v580_v7  ;;  %v963_v9 = vpop.f32.mrb[16].mxu1  ;;  %v435_v10 = vadd.f32 %v915_v8, %v1318_v6  ;;  %v429_v12 = vpop.f32.mrb[17].mxu0 }
 0x101   :  { %v595_v11 = vadd.f32 %v963_v9, %v1318_v6  ;;  %v589_v13 = vpop.f32.mrb[17].mxu1  ;;  %v430_v14 = vadd.f32 %v1318_v6, %v429_v12 }
 0x102   :  { %v590_v15 = vadd.f32 %v1318_v6, %v589_v13  ;;  %685 = vst [vmem:[#allocation2 + $0x88] sm:$0xff] %v435_v10 }
 0x103   :  { %717 = vst [vmem:[#allocation2 + $0x188] sm:$0xff] %v595_v11  ;;  %684 = vst [vmem:[#allocation2 + $0x80] sm:$0xff] %v430_v14  ;;  %v918_v16 = vpop.f32.mrb[18].mxu0 }
 0x104   :  { %716 = vst [vmem:[#allocation2 + $0x180] sm:$0xff] %v590_v15  ;;  %v966_v17 = vpop.f32.mrb[18].mxu1  ;;  %v445_v18 = vadd.f32 %v918_v16, %v1318_v6  ;;  %v439_v20 = vpop.f32.mrb[19].mxu0 }
 0x105   :  { %v605_v19 = vadd.f32 %v966_v17, %v1318_v6  ;;  %v599_v21 = vpop.f32.mrb[19].mxu1  ;;  %v440_v22 = vadd.f32 %v1318_v6, %v439_v20 }
 0x106   :  { %v600_v23 = vadd.f32 %v1318_v6, %v599_v21  ;;  %687 = vst [vmem:[#allocation2 + $0x98] sm:$0xff] %v445_v18 }
 0x107   :  { %719 = vst [vmem:[#allocation2 + $0x198] sm:$0xff] %v605_v19  ;;  %686 = vst [vmem:[#allocation2 + $0x90] sm:$0xff] %v440_v22  ;;  %v921_v24 = vpop.f32.mrb[20].mxu0 }
 0x108   :  { %718 = vst [vmem:[#allocation2 + $0x190] sm:$0xff] %v600_v23  ;;  %v969_v25 = vpop.f32.mrb[20].mxu1  ;;  %v455_v26 = vadd.f32 %v921_v24, %v1318_v6  ;;  %v449_v28 = vpop.f32.mrb[21].mxu0 }
 0x109   :  { %v615_v27 = vadd.f32 %v969_v25, %v1318_v6  ;;  %v609_v29 = vpop.f32.mrb[21].mxu1  ;;  %v450_v30 = vadd.f32 %v1318_v6, %v449_v28 }
 0x10a   :  { %v610_v31 = vadd.f32 %v1318_v6, %v609_v29  ;;  %689 = vst [vmem:[#allocation2 + $0xa8] sm:$0xff] %v455_v26 }
 0x10b   :  { %721 = vst [vmem:[#allocation2 + $0x1a8] sm:$0xff] %v615_v27  ;;  %688 = vst [vmem:[#allocation2 + $0xa0] sm:$0xff] %v450_v30  ;;  %v924_v32 = vpop.f32.mrb[22].mxu0 }
 0x10c   :  { %720 = vst [vmem:[#allocation2 + $0x1a0] sm:$0xff] %v610_v31  ;;  %v972_v33 = vpop.f32.mrb[22].mxu1  ;;  %v465_v34 = vadd.f32 %v924_v32, %v1318_v6  ;;  %v459_v36 = vpop.f32.mrb[23].mxu0 }
 0x10d   :  { %v625_v35 = vadd.f32 %v972_v33, %v1318_v6  ;;  %v619_v37 = vpop.f32.mrb[23].mxu1  ;;  %v460_v38 = vadd.f32 %v1318_v6, %v459_v36 }
 0x10e   :  { %v620_v39 = vadd.f32 %v1318_v6, %v619_v37  ;;  %691 = vst [vmem:[#allocation2 + $0xb8] sm:$0xff] %v465_v34 }
 0x10f   :  { %723 = vst [vmem:[#allocation2 + $0x1b8] sm:$0xff] %v625_v35  ;;  %690 = vst [vmem:[#allocation2 + $0xb0] sm:$0xff] %v460_v38  ;;  %v927_v40 = vpop.f32.mrb[24].mxu0 }
 0x110   :  { %722 = vst [vmem:[#allocation2 + $0x1b0] sm:$0xff] %v620_v39  ;;  %v975_v41 = vpop.f32.mrb[24].mxu1  ;;  %v475_v42 = vadd.f32 %v927_v40, %v1318_v6  ;;  %v469_v44 = vpop.f32.mrb[25].mxu0 }
 0x111   :  { %v635_v43 = vadd.f32 %v975_v41, %v1318_v6  ;;  %v629_v45 = vpop.f32.mrb[25].mxu1  ;;  %v470_v46 = vadd.f32 %v1318_v6, %v469_v44 }
 0x112   :  { %v630_v47 = vadd.f32 %v1318_v6, %v629_v45  ;;  %693 = vst [vmem:[#allocation2 + $0xc8] sm:$0xff] %v475_v42 }
 0x113   :  { %725 = vst [vmem:[#allocation2 + $0x1c8] sm:$0xff] %v635_v43  ;;  %692 = vst [vmem:[#allocation2 + $0xc0] sm:$0xff] %v470_v46  ;;  %v930_v48 = vpop.f32.mrb[26].mxu0 }
 0x114   :  { %724 = vst [vmem:[#allocation2 + $0x1c0] sm:$0xff] %v630_v47  ;;  %v978_v49 = vpop.f32.mrb[26].mxu1  ;;  %v485_v50 = vadd.f32 %v930_v48, %v1318_v6  ;;  %v479_v52 = vpop.f32.mrb[27].mxu0 }
 0x115   :  { %v645_v51 = vadd.f32 %v978_v49, %v1318_v6  ;;  %v639_v53 = vpop.f32.mrb[27].mxu1  ;;  %v480_v54 = vadd.f32 %v1318_v6, %v479_v52 }
 0x116   :  { %v640_v55 = vadd.f32 %v1318_v6, %v639_v53  ;;  %695 = vst [vmem:[#allocation2 + $0xd8] sm:$0xff] %v485_v50 }
 0x117   :  { %727 = vst [vmem:[#allocation2 + $0x1d8] sm:$0xff] %v645_v51  ;;  %694 = vst [vmem:[#allocation2 + $0xd0] sm:$0xff] %v480_v54  ;;  %v933_v56 = vpop.f32.mrb[28].mxu0 }
 0x118   :  { %726 = vst [vmem:[#allocation2 + $0x1d0] sm:$0xff] %v640_v55  ;;  %v981_v57 = vpop.f32.mrb[28].mxu1  ;;  %v495_v58 = vadd.f32 %v933_v56, %v1318_v6  ;;  %v489_v60 = vpop.f32.mrb[29].mxu0 }
 0x119   :  { %v655_v59 = vadd.f32 %v981_v57, %v1318_v6  ;;  %v649_v61 = vpop.f32.mrb[29].mxu1  ;;  %v490_v62 = vadd.f32 %v1318_v6, %v489_v60 }
 0x11a   :  { %v650_v63 = vadd.f32 %v1318_v6, %v649_v61  ;;  %697 = vst [vmem:[#allocation2 + $0xe8] sm:$0xff] %v495_v58 }
 0x11b   :  { %729 = vst [vmem:[#allocation2 + $0x1e8] sm:$0xff] %v655_v59  ;;  %696 = vst [vmem:[#allocation2 + $0xe0] sm:$0xff] %v490_v62  ;;  %v936_v0 = vpop.f32.mrb[30].mxu0 }
 0x11c   :  { %728 = vst [vmem:[#allocation2 + $0x1e0] sm:$0xff] %v650_v63  ;;  %v984_v1 = vpop.f32.mrb[30].mxu1  ;;  %v505_v2 = vadd.f32 %v936_v0, %v1318_v6  ;;  %v499_v4 = vpop.f32.mrb[31].mxu0 }
 0x11d   :  { %v665_v3 = vadd.f32 %v984_v1, %v1318_v6  ;;  %v659_v5 = vpop.f32.mrb[31].mxu1  ;;  %v500_v7 = vadd.f32 %v1318_v6, %v499_v4 }
 0x11e   :  { %v660_v8 = vadd.f32 %v1318_v6, %v659_v5  ;;  %699 = vst [vmem:[#allocation2 + $0xf8] sm:$0xff] %v505_v2 }
 0x11f   :  { %731 = vst [vmem:[#allocation2 + $0x1f8] sm:$0xff] %v665_v3  ;;  %698 = vst [vmem:[#allocation2 + $0xf0] sm:$0xff] %v500_v7 }
 0x120   :  { %730 = vst [vmem:[#allocation2 + $0x1f0] sm:$0xff] %v660_v8 }
 0x121   :  { %1011 = shalt.err (!%p1008_p4)
}
 0x122   :  { %s1012_s13 = scalar_lea.hbm %s1399_s3, 8192 }
 0x123   :  { %p1013_p5 = scmp.ne.s32.totalorder %s1399_s3, %s1012_s13  ;;  %p1016_p6 = scmp.lt.u32.totalorder %s1012_s13, %s1399_s3 }
 0x125   :  { %p1018_p7 = pnand %p1016_p6, %p1013_p5 }
 0x127   :  { %1021 = shalt.err (!%p1018_p7)
}
 0x128   :  { %s1025_s18 = smov 128   ;;  %s1026_s19 = smov 8  }
 0x129   :  { %743 = dma.vmem_to_hbm [thread:$0]  %s738_s2, 8192, %s1399_s3, [#allocation3], %s1025_s18, %s1025_s18, %s1026_s19  }
 0x12a   :  { %1022 = dma.done.wait [#allocation3], 8192  }
 0x12b   :  { %1023 = vsyncadd [#allocation3], 4294959104 }
 0x12c   :  { %747 = vsyncpa [#allocation3], 1 }

</bundles_post_ra>
